<compile_context>
chip_gen: v6e
topology: v6e:2x2x1
jax: 0.10.0
libtpu: 0.0.40
codegen_flags: <defaults>
</compile_context>

<pallas_src>
import math

import jax
import jax.numpy as jnp
from jax.experimental import pallas as pl
from jax.experimental.pallas import tpu as pltpu


def _round_up(x: int, m: int) -> int:
    return (x + m - 1) // m * m


def _vmem_budget_bytes() -> int:
    """Per-generation VMEM budget: ~3/4 of physical capacity."""
    try:
        cap = int(pltpu.get_tpu_info().vmem_capacity_bytes)
    except Exception:
        cap = 64 * 1024 * 1024  # conservative fallback (v7x per-TC size)
    # 96 MiB on v5e/v6e (128 MiB physical), 48 MiB on v7x (64 MiB/TC).
    return (cap * 3) // 4


def prepare_params(weight1, weight2, bias=None, *, compute_dtype=jnp.bfloat16):
    """One-time (init-time) padding + cast of the ProjectedLinear parameters.

    weight1: (in_features, proj_features)   == linear1.weight.T
    weight2: (proj_features, out_features)  == linear2.weight.T
    bias:    (out_features,) or None
    """
    in_f, proj_f = weight1.shape
    out_f = weight2.shape[1]

    proj_p = _round_up(proj_f, 128)
    # Keep out_p == out_f when already lane-aligned so no output slice is needed.
    out_p = out_f if out_f % 128 == 0 else _round_up(out_f, 128)

    w1_p = jnp.zeros((in_f, proj_p), compute_dtype).at[:, :proj_f].set(
        weight1.astype(compute_dtype))
    w2_p = jnp.zeros((proj_p, out_p), compute_dtype).at[:proj_f, :out_f].set(
        weight2.astype(compute_dtype))
    b_p = jnp.zeros((1, out_p), jnp.float32)
    if bias is not None:
        b_p = b_p.at[0, :out_f].set(bias.astype(jnp.float32))

    return dict(w1=w1_p, w2=w2_p, b=b_p,
                in_f=in_f, proj_f=proj_f, out_f=out_f,
                proj_p=proj_p, out_p=out_p)


def _projected_linear_kernel(x_ref, w1_ref, w2_ref, b_ref, o_ref, h_ref):
    # x_ref:  (tm, in_f)     input dtype; cast to compute dtype here
    # w1_ref: (in_f, proj_p) compute dtype, VMEM-resident (single-buffered)
    # w2_ref: (proj_p, tn)   compute dtype, streamed over the N grid axis
    # b_ref:  (1, tn)        f32, streamed over the N grid axis
    # o_ref:  (tm, tn)       output dtype
    # h_ref:  (tm, proj_p)   compute-dtype scratch, reused across the N axis
    @pl.when(pl.program_id(1) == 0)
    def _():
        x = x_ref[...].astype(w1_ref.dtype)
        h = jnp.dot(x, w1_ref[...], preferred_element_type=jnp.float32)
        # TODO(synk): optional `activation` nn.Module (default None) would be
        # applied to `h` here as an element-wise VPU op.
        h_ref[...] = h.astype(h_ref.dtype)

    out = jnp.dot(h_ref[...], w2_ref[...], preferred_element_type=jnp.float32)
    o_ref[...] = (out + b_ref[...]).astype(o_ref.dtype)


def projected_linear(x, params, *, out_dtype=None):
    """ProjectedLinear forward.   x: [..., in_features] -> [..., out_features]."""
    in_f, out_f = params["in_f"], params["out_f"]
    proj_p, out_p = params["proj_p"], params["out_p"]
    w1_p, w2_p, b_p = params["w1"], params["w2"], params["b"]
    compute_dtype = w1_p.dtype
    out_dtype = x.dtype if out_dtype is None else out_dtype

    orig_shape = x.shape
    xm = x.reshape(-1, in_f)
    m = xm.shape[0]

    # N tile: 512 is a multiple of 256 (v6e/v7x 256x256 MXU); small out_p uses
    # a single full-extent tile.
    tn = min(out_p, 512)
    grid_n = pl.cdiv(out_p, tn)

    # M tile: largest row count whose double-buffered x/out tiles + resident
    # weights + h scratch fit the per-generation VMEM budget (20% headroom).
    budget = _vmem_budget_bytes()
    x_bytes = jnp.dtype(x.dtype).itemsize
    o_bytes = jnp.dtype(out_dtype).itemsize
    c_bytes = jnp.dtype(compute_dtype).itemsize
    resident = (in_f * proj_p * c_bytes        # W1 (single-buffered, resident)
                + 2 * proj_p * tn * c_bytes    # W2 (double-buffered stream)
                + 2 * tn * 4)                  # bias (double-buffered stream)
    per_row = (2 * in_f * x_bytes              # x tile  (double-buffered)
               + 2 * tn * o_bytes              # out tile (double-buffered)
               + proj_p * c_bytes)             # h scratch
    tm = 8
    for cand in (8, 16, 32, 64, 128, 256, 512, 1024, 2048):
        if resident + cand * per_row <= (budget * 4) // 5:
            tm = cand
    if m <= tm:
        tm = m                                  # single full-extent M tile
    grid_m = pl.cdiv(m, tm)

    def build(single_buffer_w1: bool):
        if single_buffer_w1:
            w1_spec = pl.BlockSpec((in_f, proj_p), lambda i, j: (0, 0),
                                   pipeline_mode=pl.Buffered(1))
        else:
            w1_spec = pl.BlockSpec((in_f, proj_p), lambda i, j: (0, 0))
        return pl.pallas_call(
            _projected_linear_kernel,
            out_shape=jax.ShapeDtypeStruct((m, out_p), out_dtype),
            grid=(grid_m, grid_n),
            in_specs=[
                pl.BlockSpec((tm, in_f), lambda i, j: (i, 0)),     # x: M-tiled
                w1_spec,                                           # W1: resident
                pl.BlockSpec((proj_p, tn), lambda i, j: (0, j)),   # W2: N-streamed
                pl.BlockSpec((1, tn), lambda i, j: (0, j)),        # bias
            ],
            out_specs=pl.BlockSpec((tm, tn), lambda i, j: (i, j)),
            scratch_shapes=[pltpu.VMEM((tm, proj_p), compute_dtype)],
            compiler_params=pltpu.CompilerParams(
                dimension_semantics=("parallel", "arbitrary"),
                vmem_limit_bytes=int(budget),
            ),
        )

    try:
        out = build(True)(xm, w1_p, w2_p, b_p)
    except Exception:
        # Fallback if this JAX build rejects single-buffered pipeline_mode.
        out = build(False)(xm, w1_p, w2_p, b_p)

    if out_p != out_f:
        out = out[:, :out_f]
    return out.reshape(orig_shape[:-1] + (out_f,))


def _linear_uniform(key, shape, fan_in, dtype=jnp.float32):
    # Matches nn.Linear default init bound: U(-1/sqrt(fan_in), 1/sqrt(fan_in)).
    bound = 1.0 / math.sqrt(fan_in)
    return jax.random.uniform(key, shape, dtype, minval=-bound, maxval=bound)


if __name__ == "__main__":
    # Module config (defaults from ProjectedLinear.__init__)
    in_features = 32
    out_features = 32
    proj_features = in_features * out_features // (in_features + out_features)  # 16
    batch, seq = 2, 8

    key = jax.random.PRNGKey(0)
    k_x, k_w1, k_w2, k_b = jax.random.split(key, 4)

    # Parameters stored pre-transposed relative to PyTorch's (out, in) layout.
    weight1 = _linear_uniform(k_w1, (in_features, proj_features), in_features)
    weight2 = _linear_uniform(k_w2, (proj_features, out_features), proj_features)
    bias = _linear_uniform(k_b, (out_features,), proj_features)

    # Init-time (hoisted out of the forward hot path): pad + cast parameters once.
    params = prepare_params(weight1, weight2, bias)

    x = jax.random.normal(k_x, (batch, seq, in_features), jnp.float32)

    out = projected_linear(x, params)
    out = jax.block_until_ready(out)
    assert out.shape == (batch, seq, out_features)

    # Reference with the same bf16-operand / f32-accumulate numerics as the kernel.
    cd = jnp.bfloat16
    xr = x.reshape(-1, in_features).astype(cd).astype(jnp.float32)
    w1r = weight1.astype(cd).astype(jnp.float32)
    w2r = weight2.astype(cd).astype(jnp.float32)
    h_ref = jnp.dot(xr, w1r, precision=jax.lax.Precision.HIGHEST)
    h_ref = h_ref.astype(cd).astype(jnp.float32)
    ref = jnp.dot(h_ref, w2r, precision=jax.lax.Precision.HIGHEST) + bias
    ref = ref.reshape(batch, seq, out_features)
    assert jnp.allclose(out, ref, atol=5e-3, rtol=5e-3)

    # Loose check against the exact f32 module math (bf16 rounding only).
    ref_f32 = (x @ weight1) @ weight2 + bias
    assert jnp.allclose(out, ref_f32, atol=5e-2, rtol=5e-2)

    print("KERNEL_OK")
</pallas_src>

<mosaic_0001>
module attributes {stable_mosaic.version = 11 : i64} {
  func.func @_projected_linear_kernel(%arg0: i32, %arg1: i32, %arg2: memref<16x32xf32, #tpu.memory_space<vmem>>, %arg3: memref<32x128xbf16, #tpu.memory_space<vmem>>, %arg4: memref<128x128xbf16, #tpu.memory_space<vmem>>, %arg5: memref<1x128xf32, #tpu.memory_space<vmem>>, %arg6: memref<16x128xf32, #tpu.memory_space<vmem>>, %arg7: memref<16x128xbf16, #tpu.memory_space<vmem>>) attributes {dimension_semantics = [#tpu.dimension_semantics<parallel>, #tpu.dimension_semantics<arbitrary>], iteration_bounds = array<i64: 1, 1>, scalar_prefetch = 0 : i64, scratch_operands = 1 : i64, tpu.core_type = #tpu.core_type<tc>, window_params = [{transform_indices = @transform_0, window_bounds = array<i64: 16, 32>}, {pipeline_mode = #tpu.pipeline_mode<synchronous>, transform_indices = @transform_1, window_bounds = array<i64: 32, 128>}, {transform_indices = @transform_2, window_bounds = array<i64: 128, 128>}, {transform_indices = @transform_3, window_bounds = array<i64: 1, 128>}, {transform_indices = @transform_4, window_bounds = array<i64: 16, 128>}]} {
    %c0_i32 = arith.constant 0 : i32
    %0 = arith.cmpi eq, %arg1, %c0_i32 : i32
    %1 = arith.extui %0 : i1 to i32
    %c0_i32_0 = arith.constant 0 : i32
    %2 = arith.cmpi ne, %1, %c0_i32_0 : i32
    scf.if %2 {
      %c0_8 = arith.constant 0 : index
      %c0_9 = arith.constant 0 : index
      %10 = vector.load %arg2[%c0_8, %c0_9] : memref<16x32xf32, #tpu.memory_space<vmem>>, vector<16x32xf32>
      %11 = arith.truncf %10 : vector<16x32xf32> to vector<16x32xbf16>
      %c0_10 = arith.constant 0 : index
      %c0_11 = arith.constant 0 : index
      %12 = vector.load %arg3[%c0_10, %c0_11] : memref<32x128xbf16, #tpu.memory_space<vmem>>, vector<32x128xbf16>
      %cst_12 = arith.constant dense<0.000000e+00> : vector<16x128xf32>
      %13 = tpu.matmul %11, %12, %cst_12 {dimension_numbers = #tpu.dot_dimension_numbers<[1], [0], [0], [1], [0, 0, 1, 1], [], []>} : vector<16x32xbf16>, vector<32x128xbf16>, vector<16x128xf32> -> vector<16x128xf32>
      %14 = arith.truncf %13 : vector<16x128xf32> to vector<16x128xbf16>
      %c0_13 = arith.constant 0 : index
      %c0_14 = arith.constant 0 : index
      %15 = vector.load %arg7[%c0_13, %c0_14] : memref<16x128xbf16, #tpu.memory_space<vmem>>, vector<16x128xbf16>
      tpu.vector_store %arg7[%c0_13, %c0_14], %14 {strides = array<i32>} : memref<16x128xbf16, #tpu.memory_space<vmem>>, vector<16x128xbf16>,
    } else {
    }
    %c0 = arith.constant 0 : index
    %c0_1 = arith.constant 0 : index
    %3 = vector.load %arg7[%c0, %c0_1] : memref<16x128xbf16, #tpu.memory_space<vmem>>, vector<16x128xbf16>
    %c0_2 = arith.constant 0 : index
    %c0_3 = arith.constant 0 : index
    %4 = vector.load %arg4[%c0_2, %c0_3] : memref<128x128xbf16, #tpu.memory_space<vmem>>, vector<128x128xbf16>
    %cst = arith.constant dense<0.000000e+00> : vector<16x128xf32>
    %5 = tpu.matmul %3, %4, %cst {dimension_numbers = #tpu.dot_dimension_numbers<[1], [0], [0], [1], [0, 0, 1, 1], [], []>} : vector<16x128xbf16>, vector<128x128xbf16>, vector<16x128xf32> -> vector<16x128xf32>
    %c0_4 = arith.constant 0 : index
    %c0_5 = arith.constant 0 : index
    %6 = vector.load %arg5[%c0_4, %c0_5] : memref<1x128xf32, #tpu.memory_space<vmem>>, vector<1x128xf32>
    %7 = vector.broadcast %6 : vector<1x128xf32> to vector<16x128xf32>
    %8 = arith.addf %5, %7 : vector<16x128xf32>
    %c0_6 = arith.constant 0 : index
    %c0_7 = arith.constant 0 : index
    %9 = vector.load %arg6[%c0_6, %c0_7] : memref<16x128xf32, #tpu.memory_space<vmem>>, vector<16x128xf32>
    tpu.vector_store %arg6[%c0_6, %c0_7], %8 {strides = array<i32>} : memref<16x128xf32, #tpu.memory_space<vmem>>, vector<16x128xf32>,
    return
  }
  func.func @transform_0(%arg0: i32, %arg1: i32) -> (i32, i32) {
    %c0_i32 = arith.constant 0 : i32
    %c0_i32_0 = arith.constant 0 : i32
    return %arg0, %c0_i32 : i32, i32
  }
  func.func @transform_1(%arg0: i32, %arg1: i32) -> (i32, i32) {
    %c0_i32 = arith.constant 0 : i32
    %c0_i32_0 = arith.constant 0 : i32
    %c0_i32_1 = arith.constant 0 : i32
    return %c0_i32, %c0_i32_0 : i32, i32
  }
  func.func @transform_2(%arg0: i32, %arg1: i32) -> (i32, i32) {
    %c0_i32 = arith.constant 0 : i32
    %c0_i32_0 = arith.constant 0 : i32
    return %c0_i32, %arg1 : i32, i32
  }
  func.func @transform_3(%arg0: i32, %arg1: i32) -> (i32, i32) {
    %c0_i32 = arith.constant 0 : i32
    %c0_i32_0 = arith.constant 0 : i32
    return %c0_i32, %arg1 : i32, i32
  }
  func.func @transform_4(%arg0: i32, %arg1: i32) -> (i32, i32) {
    %c0_i32 = arith.constant 0 : i32
    return %arg0, %arg1 : i32, i32
  }
}

module attributes {stable_mosaic.version = 11 : i64} {
  func.func @_projected_linear_kernel(%arg0: i32, %arg1: i32, %arg2: memref<16x32xf32, #tpu.memory_space<vmem>>, %arg3: memref<32x128xbf16, #tpu.memory_space<vmem>>, %arg4: memref<128x128xbf16, #tpu.memory_space<vmem>>, %arg5: memref<1x128xf32, #tpu.memory_space<vmem>>, %arg6: memref<16x128xf32, #tpu.memory_space<vmem>>, %arg7: memref<16x128xbf16, #tpu.memory_space<vmem>>) attributes {dimension_semantics = [#tpu.dimension_semantics<parallel>, #tpu.dimension_semantics<arbitrary>], iteration_bounds = array<i64: 1, 1>, scalar_prefetch = 0 : i64, scratch_operands = 1 : i64, tpu.core_type = #tpu.core_type<tc>, window_params = [{transform_indices = @transform_0, window_bounds = array<i64: 16, 32>}, {pipeline_mode = #tpu.pipeline_mode<synchronous>, transform_indices = @transform_1, window_bounds = array<i64: 32, 128>}, {transform_indices = @transform_2, window_bounds = array<i64: 128, 128>}, {transform_indices = @transform_3, window_bounds = array<i64: 1, 128>}, {transform_indices = @transform_4, window_bounds = array<i64: 16, 128>}]} {
    %c0_i32 = arith.constant 0 : i32
    %0 = arith.cmpi eq, %arg1, %c0_i32 : i32
    %1 = arith.extui %0 : i1 to i32
    %c0_i32_0 = arith.constant 0 : i32
    %2 = arith.cmpi ne, %1, %c0_i32_0 : i32
    scf.if %2 {
      %c0_8 = arith.constant 0 : index
      %c0_9 = arith.constant 0 : index
      %10 = vector.load %arg2[%c0_8, %c0_9] : memref<16x32xf32, #tpu.memory_space<vmem>>, vector<16x32xf32>
      %11 = arith.truncf %10 : vector<16x32xf32> to vector<16x32xbf16>
      %c0_10 = arith.constant 0 : index
      %c0_11 = arith.constant 0 : index
      %12 = vector.load %arg3[%c0_10, %c0_11] : memref<32x128xbf16, #tpu.memory_space<vmem>>, vector<32x128xbf16>
      %cst_12 = arith.constant dense<0.000000e+00> : vector<16x128xf32>
      %13 = tpu.matmul %11, %12, %cst_12 {dimension_numbers = #tpu.dot_dimension_numbers<[1], [0], [0], [1], [0, 0, 1, 1], [], []>} : vector<16x32xbf16>, vector<32x128xbf16>, vector<16x128xf32> -> vector<16x128xf32>
      %14 = arith.truncf %13 : vector<16x128xf32> to vector<16x128xbf16>
      %c0_13 = arith.constant 0 : index
      %c0_14 = arith.constant 0 : index
      %15 = vector.load %arg7[%c0_13, %c0_14] : memref<16x128xbf16, #tpu.memory_space<vmem>>, vector<16x128xbf16>
      tpu.vector_store %arg7[%c0_13, %c0_14], %14 {strides = array<i32>} : memref<16x128xbf16, #tpu.memory_space<vmem>>, vector<16x128xbf16>,
    } else {
    }
    %c0 = arith.constant 0 : index
    %c0_1 = arith.constant 0 : index
    %3 = vector.load %arg7[%c0, %c0_1] : memref<16x128xbf16, #tpu.memory_space<vmem>>, vector<16x128xbf16>
    %c0_2 = arith.constant 0 : index
    %c0_3 = arith.constant 0 : index
    %4 = vector.load %arg4[%c0_2, %c0_3] : memref<128x128xbf16, #tpu.memory_space<vmem>>, vector<128x128xbf16>
    %cst = arith.constant dense<0.000000e+00> : vector<16x128xf32>
    %5 = tpu.matmul %3, %4, %cst {dimension_numbers = #tpu.dot_dimension_numbers<[1], [0], [0], [1], [0, 0, 1, 1], [], []>} : vector<16x128xbf16>, vector<128x128xbf16>, vector<16x128xf32> -> vector<16x128xf32>
    %c0_4 = arith.constant 0 : index
    %c0_5 = arith.constant 0 : index
    %6 = vector.load %arg5[%c0_4, %c0_5] : memref<1x128xf32, #tpu.memory_space<vmem>>, vector<1x128xf32>
    %7 = vector.broadcast %6 : vector<1x128xf32> to vector<16x128xf32>
    %8 = arith.addf %5, %7 : vector<16x128xf32>
    %c0_6 = arith.constant 0 : index
    %c0_7 = arith.constant 0 : index
    %9 = vector.load %arg6[%c0_6, %c0_7] : memref<16x128xf32, #tpu.memory_space<vmem>>, vector<16x128xf32>
    tpu.vector_store %arg6[%c0_6, %c0_7], %8 {strides = array<i32>} : memref<16x128xf32, #tpu.memory_space<vmem>>, vector<16x128xf32>,
    return
  }
  func.func @transform_0(%arg0: i32, %arg1: i32) -> (i32, i32) {
    %c0_i32 = arith.constant 0 : i32
    %c0_i32_0 = arith.constant 0 : i32
    return %arg0, %c0_i32 : i32, i32
  }
  func.func @transform_1(%arg0: i32, %arg1: i32) -> (i32, i32) {
    %c0_i32 = arith.constant 0 : i32
    %c0_i32_0 = arith.constant 0 : i32
    %c0_i32_1 = arith.constant 0 : i32
    return %c0_i32, %c0_i32_0 : i32, i32
  }
  func.func @transform_2(%arg0: i32, %arg1: i32) -> (i32, i32) {
    %c0_i32 = arith.constant 0 : i32
    %c0_i32_0 = arith.constant 0 : i32
    return %c0_i32, %arg1 : i32, i32
  }
  func.func @transform_3(%arg0: i32, %arg1: i32) -> (i32, i32) {
    %c0_i32 = arith.constant 0 : i32
    %c0_i32_0 = arith.constant 0 : i32
    return %c0_i32, %arg1 : i32, i32
  }
  func.func @transform_4(%arg0: i32, %arg1: i32) -> (i32, i32) {
    %c0_i32 = arith.constant 0 : i32
    return %arg0, %arg1 : i32, i32
  }
}

</mosaic_0001>

<bundles_post_ra>
// kernel: tpu_custom_call.1
= control target key start
LH: loop header
LB: loop body
LE: loop exit
PB: predicated region body
PF: predicated region fallthrough
CT: control target
= control target key end

     0   :  { %9 = vsyncpa [#allocation4], 0  ;;  %s503_s0 = inlined_call_operand.hbm [shape: f32[16,32], index: 0, kind: input, shape index: {}]   ;;  %s504_s1 = inlined_call_operand.hbm [shape: bf16[32,128], index: 1, kind: input, shape index: {}]   ;;  %s505_s2 = inlined_call_operand.hbm [shape: bf16[128,128], index: 2, kind: input, shape index: {}]   ;;  %s506_s3 = inlined_call_operand.vmem [shape: f32[1,128], index: 3, kind: input, shape index: {}]   ;;  %s507_s4 = inlined_call_operand.hbm [shape: f32[16,128], index: 4, kind: output, shape index: {}]  }
   0x1   :  { %10 = vsyncpa [#allocation7], 0 }
   0x2   :  { %11 = vsyncpa [#allocation5], 0  ;;  %s447_s15 = smov [#allocation6]  }
   0x3   :  { %s29_s16 = sshll.u32 %s447_s15, 4  ;;  %s30_s16 = int_to_ptr.vmem [resolvable:$true] %s29_s16 }
   0x4   :  { %s369_s17 = scalar_lea.vmem %s30_s16, 256  ;;  %p374_p1 = scmp.lt.s32.totalorder %s30_s16, %s30_s16 }
   0x5   :  { %p370_p0 = scmp.ne.s32.totalorder %s30_s16, %s369_s17  ;;  %p375_p2 = scmp.lt.s32.totalorder %s369_s17, %s369_s17 }
   0x7   :  { %p376_p3 = por %p375_p2, %p374_p1 }
   0x9   :  { %p377_p4 = pnand %p376_p3, %p370_p0 }
   0xb   :  { %380 = shalt.err (!%p377_p4)
}
   0xc   :  { %s448_s18 = smov 64   ;;  %s449_s19 = smov 4  }
   0xd   :  { %35 = dma.hbm_to_vmem [thread:$0]  %s504_s1, 256, %s30_s16, [#allocation7], %s448_s18, %s448_s18, %s449_s19  }
   0xe   :  { %s450_s22 = smov [#allocation3]  }
   0xf   :  { %s17_s23 = sshll.u32 %s450_s22, 4  ;;  %s18_s23 = int_to_ptr.vmem [resolvable:$true] %s17_s23 }
  0x10   :  { %s389_s24 = scalar_lea.vmem %s18_s23, 256  ;;  %p394_p6 = scmp.lt.s32.totalorder %s18_s23, %s18_s23 }
  0x11   :  { %p390_p5 = scmp.ne.s32.totalorder %s18_s23, %s389_s24  ;;  %p395_p7 = scmp.lt.s32.totalorder %s389_s24, %s389_s24 }
  0x13   :  { %p396_p8 = por %p395_p7, %p394_p6 }
  0x15   :  { %p397_p9 = pnand %p396_p8, %p390_p5 }
  0x17   :  { %400 = shalt.err (!%p397_p9)
}
  0x18   :  { %s451_s25 = smov 128   ;;  %s452_s26 = smov 8  }
  0x19   :  { %23 = dma.hbm_to_vmem [thread:$0]  %s503_s0, 256, %s18_s23, [#allocation4], %s451_s25, %s451_s25, %s452_s26  }
  0x1a   :  { %s453_s1 = smov [#allocation8]  }
  0x1b   :  { %s41_s29 = sshll.u32 %s453_s1, 4  ;;  %s42_s29 = int_to_ptr.vmem [resolvable:$true] %s41_s29 }
  0x1c   :  { %s409_s30 = scalar_lea.vmem %s42_s29, 1024  ;;  %p414_p11 = scmp.lt.s32.totalorder %s42_s29, %s42_s29 }
  0x1d   :  { %p410_p10 = scmp.ne.s32.totalorder %s42_s29, %s409_s30  ;;  %p415_p12 = scmp.lt.s32.totalorder %s409_s30, %s409_s30 }
  0x1f   :  { %p416_p13 = por %p415_p12, %p414_p11 }
  0x21   :  { %p417_p0 = pnand %p416_p13, %p410_p10 }
  0x23   :  { %420 = shalt.err (!%p417_p0)
}
  0x24   :  { %47 = dma.hbm_to_vmem [thread:$0]  %s505_s2, 1024, %s42_s29, [#allocation7], %s448_s18, %s448_s18, %s449_s19  }
  0x25   :  { %441 = dma.done.wait [#allocation4], 256  }
  0x26   :  { %442 = vsyncadd [#allocation4], 4294967040 }
  0x27   :  { %443 = dma.done.wait [#allocation7], 1280  }
  0x28   :  { %444 = vsyncadd [#allocation7], 4294966016  ;;  %v454_v0 = vmov 0.0   ;;  %vm455_vm0 = vmmov 0   ;;  %v350_v1 = vld [vmem:[#allocation6 + $0x8] sm:$0xff]   ;;  %v351_v2 = vld [vmem:[#allocation6] sm:$0xff]  }
  0x29   :  { %312 = vmatprep.subr.bf16.mxu0 %v454_v0  ;;  %316 = vmatprep.mubr.msk.bf16.mxu0 %vm455_vm0, %v454_v0  ;;  %v64_v3 = vld [vmem:[#allocation3] sm:$0xff]  ;;  %v65_v4 = vld [vmem:[#allocation3 + $0x8] sm:$0xff]  ;;  %v352_v5 = vld [vmem:[#allocation8 + $0x38] sm:$0xff]   ;;  %vm83_vm1 = vcmask 261120   ;;  %s456_s7 = smov [#allocation9]  }
  0x2a   :  { %320 = vmatprep.subr.bf16.mxu1 %v454_v0  ;;  %336 = vmatprep.mubr.msk.bf16.mxu1 %vm455_vm0, %v454_v0  ;;  %v66_v6 = vpack.c.bf16 %v65_v4, %v64_v3  ;;  %v353_v7 = vld [vmem:[#allocation8 + $0x30] sm:$0xff]   ;;  %v354_v8 = vld [vmem:[#allocation8 + $0x28] sm:$0xff]   ;;  %v355_v9 = vld [vmem:[#allocation8 + $0x20] sm:$0xff]   ;;  %s265_s8 = sshll.u32 %s456_s7, 4  ;;  %s266_s8 = int_to_ptr.vmem [resolvable:$true] %s265_s8 }
  0x2b   :  { %313 = vmatpush3.bf16.msra.mxu0 %v350_v1  ;;  %321 = vmatpush3.bf16.msra.mxu1 %v352_v5  ;;  %v356_v10 = vld [vmem:[#allocation8 + $0x18] sm:$0xff]   ;;  %v357_v11 = vld [vmem:[#allocation8 + $0x10] sm:$0xff]   ;;  %v358_v12 = vld [vmem:[#allocation8 + $0x8] sm:$0xff]   ;;  %s421_s9 = scalar_lea.vmem %s266_s8, 256  ;;  %p426_p2 = scmp.lt.s32.totalorder %s266_s8, %s266_s8 }
  0x2c   :  { %314 = vmatprep.subr.bf16.mxu0 %v454_v0  ;;  %322 = vmatprep.subr.bf16.mxu1 %v454_v0  ;;  %v359_v13 = vld [vmem:[#allocation8] sm:$0xff]   ;;  %v283_v20 = vld [vmem:[%s506_s3] ss:$0 sm:$0xff]  ;;  %p422_p1 = scmp.ne.s32.totalorder %s266_s8, %s421_s9  ;;  %p427_p3 = scmp.lt.s32.totalorder %s421_s9, %s421_s9 }
  0x2e   :  { %p428_p4 = por %p427_p3, %p426_p2 }
  0x2f   :  { %315 = vmatpush3.bf16.msra.mxu0 %v351_v2  ;;  %323 = vmatpush3.bf16.msra.mxu1 %v353_v7 }
  0x30   :  { %324 = vmatprep.subr.bf16.mxu1 %v454_v0  ;;  %p429_p5 = pnand %p428_p4, %p422_p1 }
  0x32   :  { %317 = vmatmul.mubr.msk.bf16.vlgmr.msra.gmra.mxu0 %vm83_vm1, %v66_v6 }
  0x33   :  { %325 = vmatpush3.bf16.msra.mxu1 %v354_v8 }
  0x34   :  { %326 = vmatprep.subr.bf16.mxu1 %v454_v0 }
  0x37   :  { %327 = vmatpush3.bf16.msra.mxu1 %v355_v9 }
  0x38   :  { %328 = vmatprep.subr.bf16.mxu1 %v454_v0 }
  0x3b   :  { %329 = vmatpush3.bf16.msra.mxu1 %v356_v10 }
  0x3c   :  { %330 = vmatprep.subr.bf16.mxu1 %v454_v0 }
  0x3f   :  { %331 = vmatpush3.bf16.msra.mxu1 %v357_v11 }
  0x40   :  { %332 = vmatprep.subr.bf16.mxu1 %v454_v0 }
  0x43   :  { %333 = vmatpush3.bf16.msra.mxu1 %v358_v12 }
  0x44   :  { %334 = vmatprep.subr.bf16.mxu1 %v454_v0 }
  0x47   :  { %335 = vmatpush3.bf16.msra.mxu1 %v359_v13 }
  0xf2   :  { %v121_v14 = vpop.f32.mrf.mxu0 }
  0xf4   :  { %v318_v15 = vpop.f32.mrf.mxu0 }
  0xf6   :  { %v124_v16 = vpop.f32.mrf.mxu0 }
  0xf7   :  { %v298_v17 = vpack.c.bf16 %v124_v16, %v121_v14 }
  0xf8   :  { %v319_v18 = vpop.f32.mrf.mxu0 }
  0xf9   :  { %299 = vst [vmem:[#allocation2] sm:$0xff] %v298_v17  }
 0x100   :  { %v360_v19 = vld [vmem:[#allocation2] sm:$0xff]  }
 0x101   :  { %337 = vmatmul.mubr.bf16.vlgmr.msra.gmra.mxu1 %v360_v19 }
 0x1c1   :  { %v251_v21 = vpop.f32.mrf.mxu1 }
 0x1c2   :  { %v252_v22 = vadd.f32 %v283_v20, %v251_v21 }
 0x1c3   :  { %v338_v23 = vpop.f32.mrf.mxu1 }
 0x1c4   :  { %258 = vst [vmem:[#allocation9] sm:$0xff] %v252_v22 }
 0x1c5   :  { %v254_v24 = vpop.f32.mrf.mxu1 }
 0x1c6   :  { %v255_v25 = vadd.f32 %v283_v20, %v254_v24 }
 0x1c7   :  { %v339_v26 = vpop.f32.mrf.mxu1 }
 0x1c8   :  { %259 = vst [vmem:[#allocation9 + $0x8] sm:$0xff] %v255_v25 }
 0x1c9   :  { %432 = shalt.err (!%p429_p5)
}
 0x1ca   :  { %271 = dma.vmem_to_hbm [thread:$0]  %s266_s8, 256, %s507_s4, [#allocation5], %s451_s25, %s451_s25, %s452_s26  }
 0x1cb   :  { %445 = dma.done.wait [#allocation5], 256  }
 0x1cc   :  { %446 = vsyncadd [#allocation5], 4294967040 }
 0x1cd   :  { %275 = vsyncpa [#allocation4], 1 }
 0x1ce   :  { %276 = vsyncpa [#allocation7], 1 }
 0x1cf   :  { %277 = vsyncpa [#allocation5], 1 }

// kernel: tpu_custom_call.1
= control target key start
LH: loop header
LB: loop body
LE: loop exit
PB: predicated region body
PF: predicated region fallthrough
CT: control target
= control target key end

     0   :  { %9 = vsyncpa [#allocation4], 0  ;;  %s503_s0 = inlined_call_operand.hbm [shape: f32[16,32], index: 0, kind: input, shape index: {}]   ;;  %s504_s1 = inlined_call_operand.hbm [shape: bf16[32,128], index: 1, kind: input, shape index: {}]   ;;  %s505_s2 = inlined_call_operand.hbm [shape: bf16[128,128], index: 2, kind: input, shape index: {}]   ;;  %s506_s3 = inlined_call_operand.vmem [shape: f32[1,128], index: 3, kind: input, shape index: {}]   ;;  %s507_s4 = inlined_call_operand.hbm [shape: f32[16,128], index: 4, kind: output, shape index: {}]  }
   0x1   :  { %10 = vsyncpa [#allocation7], 0 }
   0x2   :  { %11 = vsyncpa [#allocation5], 0  ;;  %s447_s15 = smov [#allocation6]  }
   0x3   :  { %s29_s16 = sshll.u32 %s447_s15, 4  ;;  %s30_s16 = int_to_ptr.vmem [resolvable:$true] %s29_s16 }
   0x4   :  { %s369_s17 = scalar_lea.vmem %s30_s16, 256  ;;  %p374_p1 = scmp.lt.s32.totalorder %s30_s16, %s30_s16 }
   0x5   :  { %p370_p0 = scmp.ne.s32.totalorder %s30_s16, %s369_s17  ;;  %p375_p2 = scmp.lt.s32.totalorder %s369_s17, %s369_s17 }
   0x7   :  { %p376_p3 = por %p375_p2, %p374_p1 }
   0x9   :  { %p377_p4 = pnand %p376_p3, %p370_p0 }
   0xb   :  { %380 = shalt.err (!%p377_p4)
}
   0xc   :  { %s448_s18 = smov 64   ;;  %s449_s19 = smov 4  }
   0xd   :  { %35 = dma.hbm_to_vmem [thread:$0]  %s504_s1, 256, %s30_s16, [#allocation7], %s448_s18, %s448_s18, %s449_s19  }
   0xe   :  { %s450_s22 = smov [#allocation3]  }
   0xf   :  { %s17_s23 = sshll.u32 %s450_s22, 4  ;;  %s18_s23 = int_to_ptr.vmem [resolvable:$true] %s17_s23 }
  0x10   :  { %s389_s24 = scalar_lea.vmem %s18_s23, 256  ;;  %p394_p6 = scmp.lt.s32.totalorder %s18_s23, %s18_s23 }
  0x11   :  { %p390_p5 = scmp.ne.s32.totalorder %s18_s23, %s389_s24  ;;  %p395_p7 = scmp.lt.s32.totalorder %s389_s24, %s389_s24 }
  0x13   :  { %p396_p8 = por %p395_p7, %p394_p6 }
  0x15   :  { %p397_p9 = pnand %p396_p8, %p390_p5 }
  0x17   :  { %400 = shalt.err (!%p397_p9)
}
  0x18   :  { %s451_s25 = smov 128   ;;  %s452_s26 = smov 8  }
  0x19   :  { %23 = dma.hbm_to_vmem [thread:$0]  %s503_s0, 256, %s18_s23, [#allocation4], %s451_s25, %s451_s25, %s452_s26  }
  0x1a   :  { %s453_s1 = smov [#allocation8]  }
  0x1b   :  { %s41_s29 = sshll.u32 %s453_s1, 4  ;;  %s42_s29 = int_to_ptr.vmem [resolvable:$true] %s41_s29 }
  0x1c   :  { %s409_s30 = scalar_lea.vmem %s42_s29, 1024  ;;  %p414_p11 = scmp.lt.s32.totalorder %s42_s29, %s42_s29 }
  0x1d   :  { %p410_p10 = scmp.ne.s32.totalorder %s42_s29, %s409_s30  ;;  %p415_p12 = scmp.lt.s32.totalorder %s409_s30, %s409_s30 }
  0x1f   :  { %p416_p13 = por %p415_p12, %p414_p11 }
  0x21   :  { %p417_p0 = pnand %p416_p13, %p410_p10 }
  0x23   :  { %420 = shalt.err (!%p417_p0)
}
  0x24   :  { %47 = dma.hbm_to_vmem [thread:$0]  %s505_s2, 1024, %s42_s29, [#allocation7], %s448_s18, %s448_s18, %s449_s19  }
  0x25   :  { %441 = dma.done.wait [#allocation4], 256  }
  0x26   :  { %442 = vsyncadd [#allocation4], 4294967040 }
  0x27   :  { %443 = dma.done.wait [#allocation7], 1280  }
  0x28   :  { %444 = vsyncadd [#allocation7], 4294966016  ;;  %v454_v0 = vmov 0.0   ;;  %vm455_vm0 = vmmov 0   ;;  %v350_v1 = vld [vmem:[#allocation6 + $0x8] sm:$0xff]   ;;  %v351_v2 = vld [vmem:[#allocation6] sm:$0xff]  }
  0x29   :  { %312 = vmatprep.subr.bf16.mxu0 %v454_v0  ;;  %316 = vmatprep.mubr.msk.bf16.mxu0 %vm455_vm0, %v454_v0  ;;  %v64_v3 = vld [vmem:[#allocation3] sm:$0xff]  ;;  %v65_v4 = vld [vmem:[#allocation3 + $0x8] sm:$0xff]  ;;  %v352_v5 = vld [vmem:[#allocation8 + $0x38] sm:$0xff]   ;;  %vm83_vm1 = vcmask 261120   ;;  %s456_s7 = smov [#allocation9]  }
  0x2a   :  { %320 = vmatprep.subr.bf16.mxu1 %v454_v0  ;;  %336 = vmatprep.mubr.msk.bf16.mxu1 %vm455_vm0, %v454_v0  ;;  %v66_v6 = vpack.c.bf16 %v65_v4, %v64_v3  ;;  %v353_v7 = vld [vmem:[#allocation8 + $0x30] sm:$0xff]   ;;  %v354_v8 = vld [vmem:[#allocation8 + $0x28] sm:$0xff]   ;;  %v355_v9 = vld [vmem:[#allocation8 + $0x20] sm:$0xff]   ;;  %s265_s8 = sshll.u32 %s456_s7, 4  ;;  %s266_s8 = int_to_ptr.vmem [resolvable:$true] %s265_s8 }
  0x2b   :  { %313 = vmatpush3.bf16.msra.mxu0 %v350_v1  ;;  %321 = vmatpush3.bf16.msra.mxu1 %v352_v5  ;;  %v356_v10 = vld [vmem:[#allocation8 + $0x18] sm:$0xff]   ;;  %v357_v11 = vld [vmem:[#allocation8 + $0x10] sm:$0xff]   ;;  %v358_v12 = vld [vmem:[#allocation8 + $0x8] sm:$0xff]   ;;  %s421_s9 = scalar_lea.vmem %s266_s8, 256  ;;  %p426_p2 = scmp.lt.s32.totalorder %s266_s8, %s266_s8 }
  0x2c   :  { %314 = vmatprep.subr.bf16.mxu0 %v454_v0  ;;  %322 = vmatprep.subr.bf16.mxu1 %v454_v0  ;;  %v359_v13 = vld [vmem:[#allocation8] sm:$0xff]   ;;  %v283_v20 = vld [vmem:[%s506_s3] ss:$0 sm:$0xff]  ;;  %p422_p1 = scmp.ne.s32.totalorder %s266_s8, %s421_s9  ;;  %p427_p3 = scmp.lt.s32.totalorder %s421_s9, %s421_s9 }
  0x2e   :  { %p428_p4 = por %p427_p3, %p426_p2 }
  0x2f   :  { %315 = vmatpush3.bf16.msra.mxu0 %v351_v2  ;;  %323 = vmatpush3.bf16.msra.mxu1 %v353_v7 }
  0x30   :  { %324 = vmatprep.subr.bf16.mxu1 %v454_v0  ;;  %p429_p5 = pnand %p428_p4, %p422_p1 }
  0x32   :  { %317 = vmatmul.mubr.msk.bf16.vlgmr.msra.gmra.mxu0 %vm83_vm1, %v66_v6 }
  0x33   :  { %325 = vmatpush3.bf16.msra.mxu1 %v354_v8 }
  0x34   :  { %326 = vmatprep.subr.bf16.mxu1 %v454_v0 }
  0x37   :  { %327 = vmatpush3.bf16.msra.mxu1 %v355_v9 }
  0x38   :  { %328 = vmatprep.subr.bf16.mxu1 %v454_v0 }
  0x3b   :  { %329 = vmatpush3.bf16.msra.mxu1 %v356_v10 }
  0x3c   :  { %330 = vmatprep.subr.bf16.mxu1 %v454_v0 }
  0x3f   :  { %331 = vmatpush3.bf16.msra.mxu1 %v357_v11 }
  0x40   :  { %332 = vmatprep.subr.bf16.mxu1 %v454_v0 }
  0x43   :  { %333 = vmatpush3.bf16.msra.mxu1 %v358_v12 }
  0x44   :  { %334 = vmatprep.subr.bf16.mxu1 %v454_v0 }
  0x47   :  { %335 = vmatpush3.bf16.msra.mxu1 %v359_v13 }
  0xf2   :  { %v121_v14 = vpop.f32.mrf.mxu0 }
  0xf4   :  { %v318_v15 = vpop.f32.mrf.mxu0 }
  0xf6   :  { %v124_v16 = vpop.f32.mrf.mxu0 }
  0xf7   :  { %v298_v17 = vpack.c.bf16 %v124_v16, %v121_v14 }
  0xf8   :  { %v319_v18 = vpop.f32.mrf.mxu0 }
  0xf9   :  { %299 = vst [vmem:[#allocation2] sm:$0xff] %v298_v17  }
 0x100   :  { %v360_v19 = vld [vmem:[#allocation2] sm:$0xff]  }
 0x101   :  { %337 = vmatmul.mubr.bf16.vlgmr.msra.gmra.mxu1 %v360_v19 }
 0x1c1   :  { %v251_v21 = vpop.f32.mrf.mxu1 }
 0x1c2   :  { %v252_v22 = vadd.f32 %v283_v20, %v251_v21 }
 0x1c3   :  { %v338_v23 = vpop.f32.mrf.mxu1 }
 0x1c4   :  { %258 = vst [vmem:[#allocation9] sm:$0xff] %v252_v22 }
 0x1c5   :  { %v254_v24 = vpop.f32.mrf.mxu1 }
 0x1c6   :  { %v255_v25 = vadd.f32 %v283_v20, %v254_v24 }
 0x1c7   :  { %v339_v26 = vpop.f32.mrf.mxu1 }
 0x1c8   :  { %259 = vst [vmem:[#allocation9 + $0x8] sm:$0xff] %v255_v25 }
 0x1c9   :  { %432 = shalt.err (!%p429_p5)
}
 0x1ca   :  { %271 = dma.vmem_to_hbm [thread:$0]  %s266_s8, 256, %s507_s4, [#allocation5], %s451_s25, %s451_s25, %s452_s26  }
 0x1cb   :  { %445 = dma.done.wait [#allocation5], 256  }
 0x1cc   :  { %446 = vsyncadd [#allocation5], 4294967040 }
 0x1cd   :  { %275 = vsyncpa [#allocation4], 1 }
 0x1ce   :  { %276 = vsyncpa [#allocation7], 1 }
 0x1cf   :  { %277 = vsyncpa [#allocation5], 1 }

</bundles_post_ra>
